<compile_context>
chip_gen: v7x
topology: tpu7x:2x2x1
jax: 0.10.0
libtpu: 0.0.40
codegen_flags: <defaults>
</compile_context>

<pallas_src>
import jax
import jax.numpy as jnp
from jax import lax
from jax.experimental import pallas as pl
from jax.experimental.pallas import tpu as pltpu


def _make_soft_embed_kernel(n_tokens: int, vocab: int, use_onehot_mxu: bool):
    def kernel(idx_ref, learned_ref, wte_ref, out_ref):
        # idx_ref     : VMEM (TQ, 1) int32, combined index space:
        #                 [0, n_tokens)            -> learned row idx
        #                 [n_tokens, n_tokens + V) -> wte row (idx - n_tokens)
        # learned_ref : VMEM (n_tokens, D)  whole-array resident, single copy
        # wte_ref     : VMEM (V, D)         whole-array resident, single copy
        # out_ref     : VMEM (TQ, D)        one dense tile per grid step
        tq = out_ref.shape[0]
        idx = idx_ref[...]                                       # (TQ, 1)

        if use_onehot_mxu:
            # Gather as one-hot matmuls on the MXU.  Rows outside a region
            # contribute exactly zero, so the two products sum to the gathered
            # row with no select / branch.
            p_oh = (idx == lax.broadcasted_iota(jnp.int32, (tq, n_tokens), 1)
                    ).astype(learned_ref.dtype)                  # (TQ, n_tokens)
            t_oh = (idx == (lax.broadcasted_iota(jnp.int32, (tq, vocab), 1)
                            + n_tokens)).astype(wte_ref.dtype)   # (TQ, V)
            acc = jnp.dot(p_oh, learned_ref[...],
                          preferred_element_type=jnp.float32)
            acc = acc + jnp.dot(t_oh, wte_ref[...],
                                preferred_element_type=jnp.float32)
            out_ref[...] = acc.astype(out_ref.dtype)
        else:
            # Moderate vocab still resident in VMEM: vectorized row gather +
            # one select (needs Mosaic gather support for axis-0 jnp.take).
            idx1 = idx[:, 0]                                     # (TQ,)
            p_rows = jnp.take(learned_ref[...],
                              jnp.clip(idx1, 0, n_tokens - 1), axis=0)
            t_rows = jnp.take(wte_ref[...],
                              jnp.clip(idx1 - n_tokens, 0, vocab - 1), axis=0)
            out_ref[...] = jnp.where(idx < n_tokens, p_rows,
                                     t_rows).astype(out_ref.dtype)

    return kernel


def soft_embedding_forward(input_ids, wte, learned, *, max_rows_per_step: int = 512):
    """[B,S] int ids -> [B, n_tokens+S, D] = concat(learned bcast, wte[ids])."""
    B, S = input_ids.shape
    n_tokens, D = learned.shape
    V, D2 = wte.shape
    assert D == D2, "wte / learned hidden dims must match"
    T = n_tokens + S

    # Output tile height: full T when it fits, otherwise a large multiple of
    # 16 (valid sublane multiple for f32/bf16) so every HBM store stays dense
    # and the ~0.35 us per-grid-step overhead is amortized.
    if T <= max_rows_per_step:
        TQ = T
    else:
        TQ = max(16, (max_rows_per_step // 16) * 16)
    num_chunks = pl.cdiv(T, TQ)
    T_pad = num_chunks * TQ

    # Combined gather index (plain JAX, tiny: B*T int32).  Clamp ids so an
    # untrusted id can never index past the wte block inside the kernel.
    ids = jnp.clip(input_ids.astype(jnp.int32), 0, V - 1)
    prompt_idx = jnp.broadcast_to(
        jnp.arange(n_tokens, dtype=jnp.int32)[None, :], (B, n_tokens))
    gather_idx = jnp.concatenate([prompt_idx, ids + n_tokens], axis=1)  # (B, T)
    if T_pad > T:
        # Padded tail rows gather learned[0]; their output rows fall outside
        # the (B, T, D) out_shape and are masked away on writeback.
        gather_idx = jnp.pad(gather_idx, ((0, 0), (0, T_pad - T)))
    gather_idx = gather_idx[:, :, None]                          # (B, T_pad, 1)

    use_onehot_mxu = (n_tokens + V) <= 2048
    # TODO(synk): for wte too large to stay VMEM-resident (full LLM vocab),
    # switch wte to memory_space=pl.ANY and gather rows with a multi-in-flight
    # pltpu.make_async_copy ring driven by the per-tile indices.

    # Generation-aware VMEM budget: resident tables are single-buffered, the
    # output tile and index block are double-buffered by the pipeline.
    itemsize = jnp.dtype(wte.dtype).itemsize
    need = ((V + n_tokens) * D * itemsize          # resident tables (1 copy)
            + 2 * TQ * D * itemsize                # double-buffered out tile
            + 2 * TQ * 4                           # double-buffered idx tile
            + (2 << 20))                           # slack / internal scratch
    try:
        phys_vmem = int(pltpu.get_tpu_info().vmem_capacity_bytes)
    except Exception:
        phys_vmem = 64 << 20                       # v7x per-core (most restrictive)
    cap = (phys_vmem * 3) // 4                     # ~48 MiB v7x, ~96 MiB v5e/v6e
    vmem_limit = int(min(max(need, 16 << 20), cap))

    return pl.pallas_call(
        _make_soft_embed_kernel(n_tokens, V, use_onehot_mxu),
        out_shape=jax.ShapeDtypeStruct((B, T, D), wte.dtype),
        grid=(B, num_chunks),
        in_specs=[
            # Per-tile index column (pipelined, tiny).
            pl.BlockSpec((None, TQ, 1), lambda b, c: (b, c, 0)),
            # Whole-array VMEM residency: DMA'd once, not double-buffered.
            pl.BlockSpec(memory_space=pltpu.MemorySpace.VMEM),   # learned
            pl.BlockSpec(memory_space=pltpu.MemorySpace.VMEM),   # wte
        ],
        out_specs=pl.BlockSpec((None, TQ, D), lambda b, c: (b, c, 0)),
        compiler_params=pltpu.CompilerParams(
            # Every output tile depends only on (b, chunk) -> fully parallel.
            dimension_semantics=("parallel", "parallel"),
            vmem_limit_bytes=vmem_limit,
        ),
    )(gather_idx, learned, wte)


if __name__ == "__main__":
    # Small, deterministic setup consistent with the module.
    B, S = 2, 8          # batch, sequence length of real tokens
    V, D = 64, 128       # vocab size, hidden dim
    n_tokens = 8         # number of soft-prompt tokens

    key = jax.random.PRNGKey(0)
    k_wte, k_ids = jax.random.split(key)

    wte = jax.random.normal(k_wte, (V, D), dtype=jnp.float32)
    # initialize_from_vocab=True  ->  learned = wte[:n_tokens]
    learned = wte[:n_tokens]
    input_ids = jax.random.randint(k_ids, (B, S), 0, V, dtype=jnp.int32)

    out = soft_embedding_forward(input_ids, wte, learned)
    out = jax.block_until_ready(out)

    # Reference in plain JAX.
    ref = jnp.concatenate(
        [jnp.broadcast_to(learned[None], (B, n_tokens, D)), wte[input_ids]], axis=1
    )
    assert out.shape == (B, n_tokens + S, D)
    assert out.dtype == wte.dtype
    # The gather runs as a one-hot matmul on the MXU; TPU f32 matmuls may use
    # bf16 passes at default precision, so compare with a tolerance far below
    # the row-to-row signal (~1.0) but above bf16 rounding (~4e-3).
    assert jnp.allclose(out, ref, rtol=1e-2, atol=1e-2), "mismatch vs reference"
    print("KERNEL_OK")
</pallas_src>

<mosaic_0001>
module attributes {stable_mosaic.version = 11 : i64} {
  func.func @kernel(%arg0: i32, %arg1: i32, %arg2: memref<1x16x1xi32, #tpu.memory_space<vmem>>, %arg3: memref<8x128xf32, #tpu.memory_space<vmem>>, %arg4: memref<64x128xf32, #tpu.memory_space<vmem>>, %arg5: memref<1x16x128xf32, #tpu.memory_space<vmem>>) attributes {dimension_semantics = [#tpu.dimension_semantics<parallel>, #tpu.dimension_semantics<parallel>], iteration_bounds = array<i64: 2, 1>, scalar_prefetch = 0 : i64, scratch_operands = 0 : i64, tpu.core_type = #tpu.core_type<tc>, window_params = [{transform_indices = @transform_0, window_bounds = array<i64: 1, 16, 1>}, {pipeline_mode = #tpu.pipeline_mode<synchronous>, transform_indices = @transform_1, window_bounds = array<i64: 8, 128>}, {pipeline_mode = #tpu.pipeline_mode<synchronous>, transform_indices = @transform_2, window_bounds = array<i64: 64, 128>}, {transform_indices = @transform_3, window_bounds = array<i64: 1, 16, 128>}]} {
    %c0 = arith.constant 0 : index
    %c0_0 = arith.constant 0 : index
    %c0_1 = arith.constant 0 : index
    %0 = vector.load %arg2[%c0, %c0_0, %c0_1] : memref<1x16x1xi32, #tpu.memory_space<vmem>>, vector<1x16x1xi32>
    %1 = vector.shape_cast %0 : vector<1x16x1xi32> to vector<16x1xi32>
    %2 = tpu.iota {dimensions = array<i32: 1>} : vector<16x8xi32>
    %3 = vector.broadcast %1 : vector<16x1xi32> to vector<16x8xi32>
    %4 = arith.cmpi eq, %3, %2 : vector<16x8xi32>
    %5 = arith.extui %4 : vector<16x8xi1> to vector<16x8xi32>
    %6 = arith.sitofp %5 : vector<16x8xi32> to vector<16x8xf32>
    %7 = tpu.iota {dimensions = array<i32: 1>} : vector<16x64xi32>
    %c8_i32 = arith.constant 8 : i32
    %8 = vector.broadcast %c8_i32 : i32 to vector<16x64xi32>
    %9 = arith.addi %7, %8 : vector<16x64xi32>
    %10 = vector.broadcast %1 : vector<16x1xi32> to vector<16x64xi32>
    %11 = arith.cmpi eq, %10, %9 : vector<16x64xi32>
    %12 = arith.extui %11 : vector<16x64xi1> to vector<16x64xi32>
    %13 = arith.sitofp %12 : vector<16x64xi32> to vector<16x64xf32>
    %c0_2 = arith.constant 0 : index
    %c0_3 = arith.constant 0 : index
    %14 = vector.load %arg3[%c0_2, %c0_3] : memref<8x128xf32, #tpu.memory_space<vmem>>, vector<8x128xf32>
    %cst = arith.constant dense<0.000000e+00> : vector<16x128xf32>
    %15 = tpu.matmul %6, %14, %cst {dimension_numbers = #tpu.dot_dimension_numbers<[1], [0], [0], [1], [0, 0, 1, 1], [], []>} : vector<16x8xf32>, vector<8x128xf32>, vector<16x128xf32> -> vector<16x128xf32>
    %c0_4 = arith.constant 0 : index
    %c0_5 = arith.constant 0 : index
    %16 = vector.load %arg4[%c0_4, %c0_5] : memref<64x128xf32, #tpu.memory_space<vmem>>, vector<64x128xf32>
    %cst_6 = arith.constant dense<0.000000e+00> : vector<16x128xf32>
    %17 = tpu.matmul %13, %16, %cst_6 {dimension_numbers = #tpu.dot_dimension_numbers<[1], [0], [0], [1], [0, 0, 1, 1], [], []>} : vector<16x64xf32>, vector<64x128xf32>, vector<16x128xf32> -> vector<16x128xf32>
    %18 = arith.addf %15, %17 : vector<16x128xf32>
    %c0_7 = arith.constant 0 : index
    %c0_8 = arith.constant 0 : index
    %c0_9 = arith.constant 0 : index
    %19 = vector.load %arg5[%c0_7, %c0_8, %c0_9] : memref<1x16x128xf32, #tpu.memory_space<vmem>>, vector<1x16x128xf32>
    %20 = vector.shape_cast %19 : vector<1x16x128xf32> to vector<16x128xf32>
    %21 = vector.shape_cast %18 : vector<16x128xf32> to vector<1x16x128xf32>
    tpu.vector_store %arg5[%c0_7, %c0_8, %c0_9], %21 {strides = array<i32>} : memref<1x16x128xf32, #tpu.memory_space<vmem>>, vector<1x16x128xf32>,
    return
  }
  func.func @transform_0(%arg0: i32, %arg1: i32) -> (i32, i32, i32) {
    %c0_i32 = arith.constant 0 : i32
    %c0_i32_0 = arith.constant 0 : i32
    return %arg0, %arg1, %c0_i32 : i32, i32, i32
  }
  func.func @transform_1(%arg0: i32, %arg1: i32) -> (i32, i32) {
    %c0_i32 = arith.constant 0 : i32
    %c0_i32_0 = arith.constant 0 : i32
    %c0_i32_1 = arith.constant 0 : i32
    return %c0_i32, %c0_i32_0 : i32, i32
  }
  func.func @transform_2(%arg0: i32, %arg1: i32) -> (i32, i32) {
    %c0_i32 = arith.constant 0 : i32
    %c0_i32_0 = arith.constant 0 : i32
    %c0_i32_1 = arith.constant 0 : i32
    return %c0_i32, %c0_i32_0 : i32, i32
  }
  func.func @transform_3(%arg0: i32, %arg1: i32) -> (i32, i32, i32) {
    %c0_i32 = arith.constant 0 : i32
    %c0_i32_0 = arith.constant 0 : i32
    return %arg0, %arg1, %c0_i32 : i32, i32, i32
  }
}

</mosaic_0001>

<bundles_post_ra>
// kernel: tpu_custom_call.1
= control target key start
LH: loop header
LB: loop body
LE: loop exit
PB: predicated region body
PF: predicated region fallthrough
CT: control target
= control target key end

     0   :  { %8 = vsyncpa [#allocation3], 0  ;;  %s969_s0 = inlined_call_operand.vmem [shape: s32[2,16,1], index: 0, kind: input, shape index: {}]   ;;  %s970_s1 = inlined_call_operand.vmem [shape: f32[8,128], index: 1, kind: input, shape index: {}]   ;;  %s971_s2 = inlined_call_operand.hbm [shape: f32[64,128], index: 2, kind: input, shape index: {}]   ;;  %s972_s3 = inlined_call_operand.hbm [shape: f32[2,16,128], index: 3, kind: output, shape index: {}]  }
   0x1   :  { %9 = vsyncpa [#allocation4], 0 }
   0x2   :  { %11 = vsyncpa [#allocation4 + $0x1], 0  ;;  %s813_s12 = smov 0   ;;  %s815_s13 = smov 0  }
   0x3   :  { %s817_s14 = smov 0   ;;  %s819_s15 = smov 0  }
   0x4   :  { %s821_s16 = smov 0   ;;  %s823_s17 = smov 0  }
   0x5 LB: > { %s520_s18 = sadd.s32 4294967295, %s783_s17   ;;  %s521_s19 = sadd.s32 4294967294, %s783_s17   ;;  %s783_s17 = sphi %s823_s17, %s17_s17   ;;  %s779_s16 = sphi %s821_s16, %s990_s16   ;;  %s775_s15 = sphi %s819_s15, %s989_s15   ;;  %s771_s14 = sphi %s817_s14, %s988_s14   ;;  %s767_s13 = sphi %s815_s13, %s987_s13   ;;  %s763_s12 = sphi %s813_s12, %s986_s12  }
   0x6   : > { %s29_s20 = sadd.s32 1, %s779_s16  ;;  %s108_s21 = sadd.s32 1, %s771_s14 }
   0x7   : > { %p31_p0 = scmp.ge.s32.totalorder %s29_s20, 2  ;;  %p118_p1 = scmp.ne.s32.totalorder %s771_s14, %s767_s13 }
   0x8   : > { %p119_p2 = scmp.eq.s32.totalorder %s520_s18, 1  ;;  %p124_p3 = scmp.ne.s32.totalorder %s767_s13, %s763_s12 }
   0x9   : > { %s992_s20 = smov (%p31_p0, %s29_s20), 0  ;;  %p125_p5 = scmp.eq.s32.totalorder %s521_s19, 1 }
   0xa   : > { %p853_p4 = por %p119_p2, %p118_p1  ;;  %s103_s23 = ssub.s32 %s779_s16, %s992_s20 }
   0xb   : > { %p522_p6 = scmp.ge.s32.totalorder %s783_s17, 1  ;;  %p106_p7 = scmp.eq.s32.totalorder %s103_s23, 0 }
   0xc   : > { %s977_s22 = scalar_select %p853_p4, 1, 0 }
   0xd   : > { %p860_p8 = por %p125_p5, %p124_p3  ;;  %p132_p9 = scmp.lt.s32.totalorder %s783_s17, 3 }
   0xe   : > { %s866_s25 = scalar_select %p106_p7, %s771_s14, %s108_s21  }
   0xf   : > { %s978_s24 = scalar_select %p860_p8, 1, 0 }
  0x10   : > { %p868_p10 = pnand %p522_p6, %p132_p9  ;;  %p872_p11 = scmp.eq.s32.totalorder %s520_s18, 0 }
  0x11   : > { %s785_s28 = smov [#allocation2]   ;;  %s673_s6 = scalar_lea.hbm %s971_s2, 1024 }
  0x12   : > { %s979_s26 = scalar_select %p868_p10, 1, 0 }
  0x13   : > { %s980_s27 = scalar_select %p872_p11, 1, 0 }
  0x14   : > { %p606_p12 = pneg %p868_p10  ;;  %s147_s29 = sshll.u32 %s785_s28, 4  ;;  %s148_s29 = int_to_ptr.vmem [resolvable:$true] %s147_s29 }
  0x15   : > { %p674_p0 = scmp.ne.s32.totalorder %s971_s2, %s673_s6  ;;  %p680_p5 = scmp.lt.u32.totalorder %s673_s6, %s971_s2 }
  0x16   : > { %p880_p13 = pnand %p872_p11, %p606_p12 }
  0x18   : > { %p675_p1 = pneg %p880_p13 }
  0x1a   : > { %p676_p2 = pnand %p675_p1, %p674_p0 }
  0x1c   : > { %p677_p3 = pneg %p676_p2 }
  0x1e   : > { %p682_p6 = pnand %p680_p5, %p677_p3 }
  0x20   : > { %685 = shalt.err (!%p682_p6)
}
  0x21   : > { %s686_s11 = scalar_lea.vmem %s148_s29, 1024  ;;  %p694_p8 = scmp.lt.s32.totalorder %s148_s29, %s148_s29 }
  0x22   : > { %p687_p7 = scmp.ne.s32.totalorder %s148_s29, %s686_s11  ;;  %p695_p4 = scmp.lt.s32.totalorder %s686_s11, %s686_s11 }
  0x24   : > { %p689_p9 = pnand %p687_p7, %p675_p1  ;;  %p696_p11 = por %p695_p4, %p694_p8 }
  0x26   : > { %p690_p12 = pneg %p689_p9 }
  0x28   : > { %p697_p10 = pnand %p696_p11, %p690_p12 }
  0x2a   : > { %700 = shalt.err (!%p697_p10)
}
  0x2b   : > { %s786_s18 = smov 128   ;;  %s787_s19 = smov 8  }
  0x2c   : > { %609 = dma.hbm_to_vmem [thread:$0]  (!%p880_p13), %s971_s2, 1024, %s148_s29, [#allocation3], %s786_s18, %s786_s18, %s787_s19  }
  0x2d   : > { %p982_p0 = scmp.ne.s32.totalorder %s979_s26, 0 }
  0x2e   : > { %p983_p2 = scmp.ne.s32.totalorder (!%p982_p0), %s980_s27, 0 }
  0x2f   : > { %176 = sbr.rel (%p982_p0) target bundleno = 426 (0x1aa), region = 32 }
  0x36   : > { %754 = dma.done.wait (%p983_p2), [#allocation3], 1024  }
  0x37   : > { %756 = vsyncadd (%p983_p2), [#allocation3], 4294966272  ;;  %p205_p4 = scmp.lt.s32.totalorder %s775_s15, 1  ;;  %v788_v0 = vmov 0   ;;  %v239_v2 = vld [vmem:[#allocation2] sm:$0xff]  ;;  %v240_v3 = vld [vmem:[#allocation2 + $0x8] sm:$0xff]  ;;  %v217_v16 = vlaneseq }
  0x38   : > { %672 = vset.pattern.permute.xlu0 %v788_v0  ;;  %v241_v4 = vld [vmem:[#allocation2 + $0x10] sm:$0xff]  ;;  %v242_v5 = vld [vmem:[#allocation2 + $0x18] sm:$0xff]  ;;  %v582_v7 = vpack.c.bf16 %v240_v3, %v239_v2  ;;  %v243_v9 = vld [vmem:[#allocation2 + $0x20] sm:$0xff]  ;;  %vm247_vm0 = vcmask 523264   ;;  %vm329_vm1 = vcmask 64512   ;;  %v789_v20 = vmov 0.0  }
  0x39   : > { %s206_s28 = scalar_select %p205_p4, %s775_s15, 1  ;;  %v586_v8 = vpack.c.bf16 %v242_v5, %v241_v4  ;;  %v244_v10 = vld [vmem:[#allocation2 + $0x28] sm:$0xff]  ;;  %v238_v11 = vld [vmem:[%s970_s1] sm:$0xff]  ;;  %v245_v13 = vld [vmem:[#allocation2 + $0x30] sm:$0xff]  ;;  %v218_v17 = vand.u32 127, %v217_v16 }
  0x3a   : > { %583 = vmatprep.subr.bf16.mxu1 %v582_v7  ;;  %v590_v12 = vpack.c.bf16 %v244_v10, %v243_v9  ;;  %577 = vmatprep.subr.mxu0 %v238_v11  ;;  %v246_v14 = vld [vmem:[#allocation2 + $0x38] sm:$0xff]  ;;  %s201_s6 = sand.u32 1, %s767_s13   ;;  %s544_s10 = sshll.u32 %s775_s15, 8 }
  0x3b   : > { %s543_s30 = sshll.u32 %s206_s28, 4  ;;  %585 = vmatpush3.bf16.msra.mxu1 %v582_v7  ;;  %578 = vmatpush3.msra.mxu0 %v238_v11  ;;  %v594_v15 = vpack.c.bf16 %v246_v14, %v245_v13  ;;  %v231_v18 = vadd.s32 8, %v218_v17  ;;  %s527_s7 = sshll.u32 %s201_s6, 4 }
  0x3c   : > { %s212_s29 = scalar_lea.vmem %s969_s0, %s543_s30  ;;  %587 = vmatprep.subr.bf16.mxu1 %v586_v8  ;;  %s203_s8 = scalar_lea.vmem [#allocation5], %s527_s7 }
  0x3d   : > { %v215_v1 = vld [vmem:[%s212_s29] sm:$0xff]  ;;  %v216_v6 = vld [vmem:[%s212_s29 + $0x8] sm:$0xff]  ;;  %s429_s9 = sshll.u32 %s203_s8, 4  ;;  %s921_s19 = scalar_lea.hbm %s972_s3, %s544_s10  ;;  %s916_s9 = int_to_ptr.vmem [resolvable:$true] %s429_s9 }
  0x3e   : > { %220 = vperm.xlu0 %672, %v215_v1   ;;  %s923_s21 = scalar_lea.sflag [#allocation4], %s201_s6  ;;  %s701_s15 = scalar_lea.vmem %s916_s9, 256 }
  0x3f   : > { %589 = vmatpush3.bf16.msra.mxu1 %v586_v8  ;;  %p702_p8 = scmp.ne.s32.totalorder %s916_s9, %s701_s15  ;;  %p984_p10 = scmp.ne.s32.totalorder %s977_s22, 0 }
  0x40   : > { %591 = vmatprep.subr.bf16.mxu1 %v590_v12  ;;  %s790_s23 = smov [#allocation5]  }
  0x41   : > { %p703_p11 = pnand %p702_p8, %p984_p10  ;;  %s705_s28 = sshll.u32 %s790_s23, 4  ;;  %s706_s28 = int_to_ptr.vmem [resolvable:$false] %s705_s28 }
  0x42   : > { %223 = vperm.xlu0 %672, %v216_v6   ;;  %s707_s30 = scalar_lea.vmem %s706_s28, 512  ;;  %p708_p1 = scmp.lt.s32.totalorder %s916_s9, %s706_s28 }
  0x43   : > { %593 = vmatpush3.bf16.msra.mxu1 %v590_v12  ;;  %p704_p13 = pneg %p703_p11  ;;  %p709_p3 = scmp.lt.s32.totalorder %s707_s30, %s701_s15 }
  0x44   : > { %595 = vmatprep.subr.bf16.mxu1 %v594_v15 }
  0x45   : > { %p710_p5 = por %p709_p3, %p708_p1 }
  0x47   : > { %597 = vmatpush3.bf16.msra.mxu1 %v594_v15  ;;  %p711_p6 = pnand %p710_p5, %p704_p13 }
  0xbd   : > { %v221_v19 = vpop.permute.xlu0 %220 }
  0xbe   : > { %vm232_vm2 = vcmp.eq.s32.totalorder %v221_v19, %v231_v18  ;;  %vm225_vm3 = vcmp.eq.s32.totalorder %v221_v19, %v218_v17 }
  0xbf   : > { %v532_v21 = vsel %vm232_vm2, 1.0, %v789_v20  ;;  %v530_v22 = vsel %vm225_vm3, 1.0, %v789_v20 }
  0xc0   : > { %574 = vmatprep.mubr.msk.f32.mxu1 %vm247_vm0, %v532_v21  ;;  %579 = vmatprep.mubr.msk.f32.mxu0 %vm329_vm1, %v530_v22 }
  0xc1   : > { %v224_v23 = vpop.permute.xlu0 %223 }
  0xc2   : > { %vm226_vm4 = vcmp.eq.s32.totalorder %v224_v23, %v218_v17  ;;  %vm233_vm5 = vcmp.eq.s32.totalorder %v224_v23, %v231_v18 }
  0xc3   : > { %v531_v24 = vsel %vm226_vm4, 1.0, %v789_v20  ;;  %v533_v25 = vsel %vm233_vm5, 1.0, %v789_v20 }
  0xc4   : > { %575 = vmatmul.mubr.msk.f32.vlgmr.msra.gmra.mrb[0].mxu1 %vm247_vm0, %v533_v25  ;;  %580 = vmatmul.mubr.msk.f32.vlgmr.msra.gmra.mrb[0].mxu0 %vm329_vm1, %v531_v24 }
 0x197   : > { %v576_v26 = vpop.f32.mrb[0].mxu1  ;;  %v581_v27 = vpop.f32.mrb[0].mxu0 }
 0x198   : > { %v408_v28 = vadd.f32 %v581_v27, %v576_v26  ;;  %v320_v29 = vpop.f32.mrb[1].mxu1  ;;  %v402_v30 = vpop.f32.mrb[1].mxu0 }
 0x199   : > { %v403_v31 = vadd.f32 %v402_v30, %v320_v29 }
 0x19a   : > { %412 = vst [vmem:[%s203_s8 + $0x8] sm:$0xff] %v408_v28 }
 0x19b   : > { %411 = vst [vmem:[%s203_s8] sm:$0xff] %v403_v31 }
 0x19c   : > { %714 = shalt.err (!%p711_p6)
}
 0x19d   : > { %s715_s4 = scalar_lea.hbm %s921_s19, 256  ;;  %s719_s26 = scalar_lea.hbm %s972_s3, 512 }
 0x19e   : > { %p716_p7 = scmp.ne.s32.totalorder %s921_s19, %s715_s4  ;;  %p720_p0 = scmp.lt.u32.totalorder %s921_s19, %s972_s3 }
 0x19f   : > { %p721_p2 = scmp.lt.u32.totalorder %s719_s26, %s715_s4  ;;  %p723_p8 = scmp.lt.u32.totalorder %s715_s4, %s921_s19 }
 0x1a0   : > { %p717_p9 = pnand %p716_p7, %p984_p10 }
 0x1a1   : > { %p722_p4 = por %p721_p2, %p720_p0 }
 0x1a2   : > { %p718_p12 = pneg %p717_p9 }
 0x1a3   : > { %p724_p11 = por %p723_p8, %p722_p4 }
 0x1a5   : > { %p725_p13 = pnand %p724_p11, %p718_p12 }
 0x1a7   : > { %728 = shalt.err (!%p725_p13)
}
 0x1a8   : > { %s791_s7 = smov 128   ;;  %s792_s8 = smov 8  }
 0x1a9   : > { %604 = dma.vmem_to_hbm [thread:$0]  (%p984_p10), %s916_s9, 256, %s921_s19, %s923_s21, %s791_s7, %s791_s7, %s792_s8  }
 0x1aa PF: > { %p616_p1 = scmp.ge.s32.totalorder %s783_s17, 2  ;;  %s444_s10 = sand.u32 1, %s763_s12  }
 0x1ab   : > { %p985_p3 = scmp.ne.s32.totalorder %s978_s24, 0  ;;  %s445_s11 = scalar_lea.sflag [#allocation4], %s444_s10 }
 0x1ad   : > { %p611_p5 = pnand %p616_p1, %p985_p3 }
 0x1af   : > { %758 = dma.done.wait (!%p611_p5), %s445_s11, 256  }
 0x1b0   : > { %760 = vsyncadd (!%p611_p5), %s445_s11, 4294967040  ;;  %s17_s17 = sadd.s32 1, %s783_s17   ;;  %s986_s12 = smov %s767_s13 }
 0x1b1   : > { %p14_p6 = scmp.ge.s32.totalorder %s17_s17, 4   ;;  %s987_s13 = smov %s771_s14 }
 0x1b2   : > { %s988_s14 = smov %s866_s25  ;;  %s989_s15 = smov %s779_s16 }
 0x1b3   : > { %s990_s16 = smov %s992_s20  ;;  %16 = sbr.rel (!%p14_p6) target bundleno = 5 (0x5), region = 72 }
 0x1ba   :  { %450 = vsyncpa [#allocation3], 1 }
 0x1bb   :  { %452 = vsyncpa [#allocation3 + $0x1], 1 }
 0x1bc   :  { %453 = vsyncpa [#allocation4], 1 }
 0x1bd   :  { %455 = vsyncpa [#allocation4 + $0x1], 1 }

</bundles_post_ra>
